<compile_context>
chip_gen: v7x
topology: tpu7x:2x2x1
jax: 0.10.0
libtpu: 0.0.40
codegen_flags: <defaults>
</compile_context>

<pallas_src>
import functools

import jax
import jax.numpy as jnp
from jax import lax
from jax.experimental import pallas as pl
from jax.experimental.pallas import tpu as pltpu


def _round_up(x, m):
    return ((x + m - 1) // m) * m


def _make_mil_kernel(n_actual, tile_n, d, k):
    """Kernel body. Grid = (n_pad // tile_n,) over the instance axis."""
    k1 = (k == 1)

    def kernel(feats_ref, wvu_ref, bvu_ref, ww_ref, bw_ref,
               logits_ref, emb_ref, m_sc, s_sc, acc_sc):
        i = pl.program_id(0)

        @pl.when(i == 0)
        def _init():
            m_sc[...] = jnp.full_like(m_sc, -jnp.inf)
            s_sc[...] = jnp.zeros_like(s_sc)
            acc_sc[...] = jnp.zeros_like(acc_sc)

        feats = feats_ref[...]                                    # (TN, L) f32

        # ---- fused attention_V / attention_U projection: one MXU matmul ----
        z = (jnp.dot(feats, wvu_ref[...],
                     preferred_element_type=jnp.float32)
             + bvu_ref[...])                                      # (TN, 2D)
        a_v = jnp.tanh(z[:, :d])                                  # (TN, D)
        a_u = jax.nn.sigmoid(z[:, d:])                            # (TN, D)
        gated = a_v * a_u                                         # (TN, D)

        # ---- attention_weights: Linear(D, K)  (torch layout ww = (K, D)) ----
        if k1:
            # VPU multiply + lane reduce instead of a 1-column MXU matvec.
            logits = (jnp.sum(gated * ww_ref[...], axis=-1, keepdims=True)
                      + bw_ref[0, 0])                             # (TN, 1)
        else:
            logits = (lax.dot_general(
                gated, ww_ref[...],
                dimension_numbers=(((1,), (1,)), ((), ())),
                preferred_element_type=jnp.float32)
                + bw_ref[...])                                    # (TN, K)
        logits_ref[...] = logits

        # ---- online softmax over the instance axis (spans grid steps) ----
        row = i * tile_n + lax.broadcasted_iota(jnp.int32, (tile_n, 1), 0)
        valid = row < n_actual
        masked = jnp.where(valid, logits, -jnp.inf)               # (TN, K)

        m_prev = m_sc[...]
        m_new = jnp.maximum(m_prev, jnp.max(masked, axis=0, keepdims=True))
        alpha = jnp.exp(m_prev - m_new)                           # (1, K)
        p = jnp.exp(masked - m_new)                               # (TN, K)
        s_sc[...] = alpha * s_sc[...] + jnp.sum(p, axis=0, keepdims=True)
        m_sc[...] = m_new

        if k1:
            # Lane-dense (1, L) weighted row-sum: no feats.T, no MXU.
            contrib = jnp.sum(p * feats, axis=0, keepdims=True)   # (1, L)
        else:
            # feats^T @ p without materializing the transpose (contract dim 0).
            contrib = lax.dot_general(
                feats, p, dimension_numbers=(((0,), (0,)), ((), ())),
                preferred_element_type=jnp.float32)               # (L, K)
        acc_sc[...] = alpha * acc_sc[...] + contrib

        @pl.when(i == pl.num_programs(0) - 1)
        def _finalize():
            emb_ref[...] = acc_sc[...] * pl.reciprocal(s_sc[...], approx=True)

    return kernel


def attention_mil_forward(feats, wv, bv, wu, bu, ww, bw, *, tile_n=None):
    """Gated attention MIL forward.

    feats: (N, L) float32.
    Torch-layout params: wv, wu: (D, L); bv, bu: (D,); ww: (K, D); bw: (K,).
    Returns (embedding, w_logits) matching the PyTorch module.
    """
    n, l = feats.shape
    d = wv.shape[0]
    k = ww.shape[0]
    k1 = (k == 1)

    # Fuse the V/U projections into a single (L, 2D) weight / (1, 2D) bias.
    wvu = jnp.concatenate([wv.T, wu.T], axis=1).astype(jnp.float32)   # (L, 2D)
    bvu = jnp.concatenate([bv, bu]).reshape(1, 2 * d).astype(jnp.float32)
    ww_arg = ww.astype(jnp.float32)                                   # (K, D)
    bw_arg = bw.reshape(1, k).astype(jnp.float32)                     # (1, K)

    # Tile over the instance axis; pad N up to a multiple of the tile.
    # (Tile size can be raised per-generation; 256 rows is safe for v7x's
    #  smaller VMEM and fine for v5e/v6e.)
    if tile_n is None:
        tile_n = 256
    tile_n = min(_round_up(tile_n, 8), _round_up(n, 8))
    n_pad = pl.cdiv(n, tile_n) * tile_n

    feats_p = feats.astype(jnp.float32)
    if n_pad != n:
        feats_p = jnp.pad(feats_p, ((0, n_pad - n), (0, 0)))

    smem = pltpu.MemorySpace.SMEM

    in_specs = [
        pl.BlockSpec((tile_n, l), lambda i: (i, 0)),      # feats tile
        pl.BlockSpec((l, 2 * d), lambda i: (0, 0)),       # fused V/U weight
        pl.BlockSpec((1, 2 * d), lambda i: (0, 0)),       # fused V/U bias
        pl.BlockSpec((k, d), lambda i: (0, 0)),           # attention_weights W
    ]
    if k1:
        in_specs.append(pl.BlockSpec(memory_space=smem))  # scalar b_w in SMEM
    else:
        in_specs.append(pl.BlockSpec((1, k), lambda i: (0, 0)))

    if k1:
        emb_shape = (1, l)                                # lane-dense output
        scratch = [pltpu.VMEM((1, 1), jnp.float32),       # running max
                   pltpu.VMEM((1, 1), jnp.float32),       # running sum
                   pltpu.VMEM((1, l), jnp.float32)]       # running accumulator
    else:
        emb_shape = (l, k)
        scratch = [pltpu.VMEM((1, k), jnp.float32),
                   pltpu.VMEM((1, k), jnp.float32),
                   pltpu.VMEM((l, k), jnp.float32)]

    out_shape = (
        jax.ShapeDtypeStruct((n_pad, k), jnp.float32),    # w_logits (padded N)
        jax.ShapeDtypeStruct(emb_shape, jnp.float32),     # embedding
    )
    out_specs = (
        pl.BlockSpec((tile_n, k), lambda i: (i, 0)),
        pl.BlockSpec(emb_shape, lambda i: (0, 0)),
    )

    flops = (2 * n_pad * l * 2 * d        # fused gating matmul
             + 2 * n_pad * d * k          # logits
             + 2 * n_pad * l * k)         # embedding accumulation
    transcendentals = n_pad * 2 * d + n_pad * k
    bytes_accessed = 4 * (n_pad * l + l * 2 * d + 2 * d + k * d + k
                          + n_pad * k + emb_shape[0] * emb_shape[1])

    kernel = _make_mil_kernel(n, tile_n, d, k)

    logits_p, emb = pl.pallas_call(
        kernel,
        out_shape=out_shape,
        grid_spec=pltpu.PrefetchScalarGridSpec(
            num_scalar_prefetch=0,
            grid=(n_pad // tile_n,),
            in_specs=in_specs,
            out_specs=out_specs,
            scratch_shapes=scratch),
        compiler_params=pltpu.CompilerParams(
            dimension_semantics=("arbitrary",)),
        cost_estimate=pl.CostEstimate(
            flops=flops,
            transcendentals=transcendentals,
            bytes_accessed=bytes_accessed),
    )(feats_p, wvu, bvu, ww_arg, bw_arg)

    logits = logits_p[:n]
    # torch.squeeze: K==1 -> (L,); K>1 -> (L, K) unchanged.
    embedding = jnp.squeeze(emb)
    return embedding, logits


def _init_params(key, L, D, K):
    """torch.nn.Linear-style init, torch layouts: W (out, in), b (out,)."""
    ks = jax.random.split(key, 6)

    def u(kk, shape, fan_in):
        bnd = 1.0 / jnp.sqrt(jnp.float32(fan_in))
        return jax.random.uniform(kk, shape, jnp.float32, -bnd, bnd)

    wv = u(ks[0], (D, L), L)
    bv = u(ks[1], (D,), L)
    wu = u(ks[2], (D, L), L)
    bu = u(ks[3], (D,), L)
    ww = u(ks[4], (K, D), D)
    bw = u(ks[5], (K,), D)
    return wv, bv, wu, bu, ww, bw


def _reference(feats, wv, bv, wu, bu, ww, bw):
    a_v = jnp.tanh(feats @ wv.T + bv)
    a_u = jax.nn.sigmoid(feats @ wu.T + bu)
    logits = (a_v * a_u) @ ww.T + bw
    attn = jax.nn.softmax(logits, axis=0)
    emb = jnp.squeeze(feats.T @ attn)
    return emb, logits


if __name__ == "__main__":
    # Small shapes consistent with the module: N instances of L-dim features.
    # N=40 with tile_n=16 exercises the multi-tile online softmax + padding.
    N, L, D, K = 40, 32, 16, 1

    key = jax.random.PRNGKey(0)
    k_feats, k_params = jax.random.split(key)
    feats = jax.random.normal(k_feats, (N, L), jnp.float32)
    params = _init_params(k_params, L, D, K)

    fwd = jax.jit(functools.partial(attention_mil_forward, tile_n=16))
    emb, logits = fwd(feats, *params)
    jax.block_until_ready((emb, logits))

    # Sanity check against a pure-JAX reference.
    emb_ref, logits_ref = _reference(feats, *params)
    assert emb.shape == (L,), emb.shape
    assert logits.shape == (N, K), logits.shape
    assert jnp.allclose(logits, logits_ref, atol=1e-4, rtol=1e-4), \
        float(jnp.max(jnp.abs(logits - logits_ref)))
    assert jnp.allclose(emb, emb_ref, atol=2e-3, rtol=2e-3), \
        float(jnp.max(jnp.abs(emb - emb_ref)))

    print("KERNEL_OK")
</pallas_src>

<mosaic_0001>
module attributes {stable_mosaic.version = 11 : i64} {
  func.func @kernel(%arg0: i32, %arg1: memref<16x32xf32, #tpu.memory_space<vmem>>, %arg2: memref<32x32xf32, #tpu.memory_space<vmem>>, %arg3: memref<1x32xf32, #tpu.memory_space<vmem>>, %arg4: memref<1x16xf32, #tpu.memory_space<vmem>>, %arg5: memref<1x1xf32, #tpu.memory_space<smem>>, %arg6: memref<16x1xf32, #tpu.memory_space<vmem>>, %arg7: memref<1x32xf32, #tpu.memory_space<vmem>>, %arg8: memref<1x1xf32, #tpu.memory_space<vmem>>, %arg9: memref<1x1xf32, #tpu.memory_space<vmem>>, %arg10: memref<1x32xf32, #tpu.memory_space<vmem>>) attributes {dimension_semantics = [#tpu.dimension_semantics<arbitrary>], iteration_bounds = array<i64: 3>, scalar_prefetch = 0 : i64, scratch_operands = 3 : i64, tpu.core_type = #tpu.core_type<tc>, window_params = [{transform_indices = @transform_0, window_bounds = array<i64: 16, 32>}, {pipeline_mode = #tpu.pipeline_mode<synchronous>, transform_indices = @transform_1, window_bounds = array<i64: 32, 32>}, {pipeline_mode = #tpu.pipeline_mode<synchronous>, transform_indices = @transform_2, window_bounds = array<i64: 1, 32>}, {pipeline_mode = #tpu.pipeline_mode<synchronous>, transform_indices = @transform_3, window_bounds = array<i64: 1, 16>}, {transform_indices = @transform_4, window_bounds = array<i64: 1, 1>}, {transform_indices = @transform_5, window_bounds = array<i64: 16, 1>}, {pipeline_mode = #tpu.pipeline_mode<synchronous>, transform_indices = @transform_6, window_bounds = array<i64: 1, 32>}]} {
    %c0_i32 = arith.constant 0 : i32
    %0 = arith.cmpi eq, %arg0, %c0_i32 : i32
    %1 = arith.extui %0 : i1 to i32
    %c0_i32_0 = arith.constant 0 : i32
    %2 = arith.cmpi ne, %1, %c0_i32_0 : i32
    scf.if %2 {
      %cst_31 = arith.constant 0xFF800000 : f32
      %63 = vector.broadcast %cst_31 : f32 to vector<1x1xf32>
      %c0_32 = arith.constant 0 : index
      %c0_33 = arith.constant 0 : index
      %64 = vector.load %arg8[%c0_32, %c0_33] : memref<1x1xf32, #tpu.memory_space<vmem>>, vector<1x1xf32>
      tpu.vector_store %arg8[%c0_32, %c0_33], %63 {strides = array<i32>} : memref<1x1xf32, #tpu.memory_space<vmem>>, vector<1x1xf32>,
      %cst_34 = arith.constant 0.000000e+00 : f32
      %65 = vector.broadcast %cst_34 : f32 to vector<1x1xf32>
      %c0_35 = arith.constant 0 : index
      %c0_36 = arith.constant 0 : index
      %66 = vector.load %arg9[%c0_35, %c0_36] : memref<1x1xf32, #tpu.memory_space<vmem>>, vector<1x1xf32>
      tpu.vector_store %arg9[%c0_35, %c0_36], %65 {strides = array<i32>} : memref<1x1xf32, #tpu.memory_space<vmem>>, vector<1x1xf32>,
      %cst_37 = arith.constant 0.000000e+00 : f32
      %67 = vector.broadcast %cst_37 : f32 to vector<1x32xf32>
      %c0_38 = arith.constant 0 : index
      %c0_39 = arith.constant 0 : index
      %68 = vector.load %arg10[%c0_38, %c0_39] : memref<1x32xf32, #tpu.memory_space<vmem>>, vector<1x32xf32>
      tpu.vector_store %arg10[%c0_38, %c0_39], %67 {strides = array<i32>} : memref<1x32xf32, #tpu.memory_space<vmem>>, vector<1x32xf32>,
    } else {
    }
    %c0 = arith.constant 0 : index
    %c0_1 = arith.constant 0 : index
    %3 = vector.load %arg1[%c0, %c0_1] : memref<16x32xf32, #tpu.memory_space<vmem>>, vector<16x32xf32>
    %c0_2 = arith.constant 0 : index
    %c0_3 = arith.constant 0 : index
    %4 = vector.load %arg2[%c0_2, %c0_3] : memref<32x32xf32, #tpu.memory_space<vmem>>, vector<32x32xf32>
    %cst = arith.constant dense<0.000000e+00> : vector<16x32xf32>
    %5 = tpu.matmul %3, %4, %cst {dimension_numbers = #tpu.dot_dimension_numbers<[1], [0], [0], [1], [0, 0, 1, 1], [], []>} : vector<16x32xf32>, vector<32x32xf32>, vector<16x32xf32> -> vector<16x32xf32>
    %c0_4 = arith.constant 0 : index
    %c0_5 = arith.constant 0 : index
    %6 = vector.load %arg3[%c0_4, %c0_5] : memref<1x32xf32, #tpu.memory_space<vmem>>, vector<1x32xf32>
    %7 = vector.broadcast %6 : vector<1x32xf32> to vector<16x32xf32>
    %8 = arith.addf %5, %7 : vector<16x32xf32>
    %9 = vector.extract_strided_slice %8 {offsets = [0, 0], sizes = [16, 16], strides = [1, 1]} : vector<16x32xf32> to vector<16x16xf32>
    %10 = math.tanh %9 : vector<16x16xf32>
    %11 = vector.extract_strided_slice %8 {offsets = [0, 16], sizes = [16, 16], strides = [1, 1]} : vector<16x32xf32> to vector<16x16xf32>
    %12 = arith.negf %11 : vector<16x16xf32>
    %13 = math.exp %12 : vector<16x16xf32>
    %cst_6 = arith.constant 1.000000e+00 : f32
    %14 = vector.broadcast %cst_6 : f32 to vector<16x16xf32>
    %15 = arith.addf %14, %13 : vector<16x16xf32>
    %16 = arith.divf %14, %15 : vector<16x16xf32>
    %17 = arith.mulf %10, %16 : vector<16x16xf32>
    %c0_7 = arith.constant 0 : index
    %c0_8 = arith.constant 0 : index
    %18 = vector.load %arg4[%c0_7, %c0_8] : memref<1x16xf32, #tpu.memory_space<vmem>>, vector<1x16xf32>
    %19 = vector.broadcast %18 : vector<1x16xf32> to vector<16x16xf32>
    %20 = arith.mulf %17, %19 : vector<16x16xf32>
    %cst_9 = arith.constant dense<0.000000e+00> : vector<16xf32>
    %21 = vector.multi_reduction <add>, %20, %cst_9 [1] : vector<16x16xf32> to vector<16xf32>
    %22 = vector.shape_cast %21 : vector<16xf32> to vector<16x1xf32>
    %c0_10 = arith.constant 0 : index
    %c0_11 = arith.constant 0 : index
    %23 = memref.load %arg5[%c0_10, %c0_11] : memref<1x1xf32, #tpu.memory_space<smem>>
    %24 = vector.broadcast %23 : f32 to vector<16x1xf32>
    %25 = arith.addf %22, %24 : vector<16x1xf32>
    %c0_12 = arith.constant 0 : index
    %c0_13 = arith.constant 0 : index
    %26 = vector.load %arg6[%c0_12, %c0_13] : memref<16x1xf32, #tpu.memory_space<vmem>>, vector<16x1xf32>
    tpu.vector_store %arg6[%c0_12, %c0_13], %25 {strides = array<i32>} : memref<16x1xf32, #tpu.memory_space<vmem>>, vector<16x1xf32>,
    %c16_i32 = arith.constant 16 : i32
    %27 = arith.muli %arg0, %c16_i32 : i32
    %28 = tpu.iota {dimensions = array<i32: 0>} : vector<16x1xi32>
    %29 = vector.broadcast %27 : i32 to vector<16x1xi32>
    %30 = arith.addi %29, %28 : vector<16x1xi32>
    %c40_i32 = arith.constant 40 : i32
    %31 = vector.broadcast %c40_i32 : i32 to vector<16x1xi32>
    %32 = arith.cmpi slt, %30, %31 : vector<16x1xi32>
    %cst_14 = arith.constant 0xFF800000 : f32
    %33 = vector.broadcast %cst_14 : f32 to vector<16x1xf32>
    %34 = arith.select %32, %25, %33 : vector<16x1xi1>, vector<16x1xf32>
    %c0_15 = arith.constant 0 : index
    %c0_16 = arith.constant 0 : index
    %35 = vector.load %arg8[%c0_15, %c0_16] : memref<1x1xf32, #tpu.memory_space<vmem>>, vector<1x1xf32>
    %cst_17 = arith.constant dense<0xFF800000> : vector<1xf32>
    %36 = vector.multi_reduction <maximumf>, %34, %cst_17 [0] : vector<16x1xf32> to vector<1xf32>
    %37 = vector.shape_cast %36 : vector<1xf32> to vector<1x1xf32>
    %38 = arith.maximumf %35, %37 : vector<1x1xf32>
    %39 = arith.subf %35, %38 : vector<1x1xf32>
    %40 = math.exp %39 : vector<1x1xf32>
    %41 = vector.broadcast %38 : vector<1x1xf32> to vector<16x1xf32>
    %42 = arith.subf %34, %41 : vector<16x1xf32>
    %43 = math.exp %42 : vector<16x1xf32>
    %c0_18 = arith.constant 0 : index
    %c0_19 = arith.constant 0 : index
    %44 = vector.load %arg9[%c0_18, %c0_19] : memref<1x1xf32, #tpu.memory_space<vmem>>, vector<1x1xf32>
    %45 = arith.mulf %40, %44 : vector<1x1xf32>
    %cst_20 = arith.constant dense<0.000000e+00> : vector<1xf32>
    %46 = vector.multi_reduction <add>, %43, %cst_20 [0] : vector<16x1xf32> to vector<1xf32>
    %47 = vector.shape_cast %46 : vector<1xf32> to vector<1x1xf32>
    %48 = arith.addf %45, %47 : vector<1x1xf32>
    %c0_21 = arith.constant 0 : index
    %c0_22 = arith.constant 0 : index
    %49 = vector.load %arg9[%c0_21, %c0_22] : memref<1x1xf32, #tpu.memory_space<vmem>>, vector<1x1xf32>
    tpu.vector_store %arg9[%c0_21, %c0_22], %48 {strides = array<i32>} : memref<1x1xf32, #tpu.memory_space<vmem>>, vector<1x1xf32>,
    %c0_23 = arith.constant 0 : index
    %c0_24 = arith.constant 0 : index
    %50 = vector.load %arg8[%c0_23, %c0_24] : memref<1x1xf32, #tpu.memory_space<vmem>>, vector<1x1xf32>
    tpu.vector_store %arg8[%c0_23, %c0_24], %38 {strides = array<i32>} : memref<1x1xf32, #tpu.memory_space<vmem>>, vector<1x1xf32>,
    %51 = vector.broadcast %43 : vector<16x1xf32> to vector<16x32xf32>
    %52 = arith.mulf %51, %3 : vector<16x32xf32>
    %cst_25 = arith.constant dense<0.000000e+00> : vector<32xf32>
    %53 = vector.multi_reduction <add>, %52, %cst_25 [0] : vector<16x32xf32> to vector<32xf32>
    %54 = vector.shape_cast %53 : vector<32xf32> to vector<1x32xf32>
    %c0_26 = arith.constant 0 : index
    %c0_27 = arith.constant 0 : index
    %55 = vector.load %arg10[%c0_26, %c0_27] : memref<1x32xf32, #tpu.memory_space<vmem>>, vector<1x32xf32>
    %56 = vector.broadcast %40 : vector<1x1xf32> to vector<1x32xf32>
    %57 = arith.mulf %56, %55 : vector<1x32xf32>
    %58 = arith.addf %57, %54 : vector<1x32xf32>
    %c0_28 = arith.constant 0 : index
    %c0_29 = arith.constant 0 : index
    %59 = vector.load %arg10[%c0_28, %c0_29] : memref<1x32xf32, #tpu.memory_space<vmem>>, vector<1x32xf32>
    tpu.vector_store %arg10[%c0_28, %c0_29], %58 {strides = array<i32>} : memref<1x32xf32, #tpu.memory_space<vmem>>, vector<1x32xf32>,
    %c2_i32 = arith.constant 2 : i32
    %60 = arith.cmpi eq, %arg0, %c2_i32 : i32
    %61 = arith.extui %60 : i1 to i32
    %c0_i32_30 = arith.constant 0 : i32
    %62 = arith.cmpi ne, %61, %c0_i32_30 : i32
    scf.if %62 {
      %c0_31 = arith.constant 0 : index
      %c0_32 = arith.constant 0 : index
      %63 = vector.load %arg10[%c0_31, %c0_32] : memref<1x32xf32, #tpu.memory_space<vmem>>, vector<1x32xf32>
      %c0_33 = arith.constant 0 : index
      %c0_34 = arith.constant 0 : index
      %64 = vector.load %arg9[%c0_33, %c0_34] : memref<1x1xf32, #tpu.memory_space<vmem>>, vector<1x1xf32>
      %65 = tpu.reciprocal %64 {approx = true} : vector<1x1xf32> -> vector<1x1xf32>
      %66 = vector.broadcast %65 : vector<1x1xf32> to vector<1x32xf32>
      %67 = arith.mulf %63, %66 : vector<1x32xf32>
      %c0_35 = arith.constant 0 : index
      %c0_36 = arith.constant 0 : index
      %68 = vector.load %arg7[%c0_35, %c0_36] : memref<1x32xf32, #tpu.memory_space<vmem>>, vector<1x32xf32>
      tpu.vector_store %arg7[%c0_35, %c0_36], %67 {strides = array<i32>} : memref<1x32xf32, #tpu.memory_space<vmem>>, vector<1x32xf32>,
    } else {
    }
    return
  }
  func.func @transform_0(%arg0: i32) -> (i32, i32) {
    %c0_i32 = arith.constant 0 : i32
    %c0_i32_0 = arith.constant 0 : i32
    return %arg0, %c0_i32 : i32, i32
  }
  func.func @transform_1(%arg0: i32) -> (i32, i32) {
    %c0_i32 = arith.constant 0 : i32
    %c0_i32_0 = arith.constant 0 : i32
    %c0_i32_1 = arith.constant 0 : i32
    return %c0_i32, %c0_i32_0 : i32, i32
  }
  func.func @transform_2(%arg0: i32) -> (i32, i32) {
    %c0_i32 = arith.constant 0 : i32
    %c0_i32_0 = arith.constant 0 : i32
    %c0_i32_1 = arith.constant 0 : i32
    return %c0_i32, %c0_i32_0 : i32, i32
  }
  func.func @transform_3(%arg0: i32) -> (i32, i32) {
    %c0_i32 = arith.constant 0 : i32
    %c0_i32_0 = arith.constant 0 : i32
    %c0_i32_1 = arith.constant 0 : i32
    return %c0_i32, %c0_i32_0 : i32, i32
  }
  func.func @transform_4(%arg0: i32) -> (i32, i32) {
    %c0_i32 = arith.constant 0 : i32
    %c0_i32_0 = arith.constant 0 : i32
    %c0_i32_1 = arith.constant 0 : i32
    return %c0_i32, %c0_i32_0 : i32, i32
  }
  func.func @transform_5(%arg0: i32) -> (i32, i32) {
    %c0_i32 = arith.constant 0 : i32
    %c0_i32_0 = arith.constant 0 : i32
    return %arg0, %c0_i32 : i32, i32
  }
  func.func @transform_6(%arg0: i32) -> (i32, i32) {
    %c0_i32 = arith.constant 0 : i32
    %c0_i32_0 = arith.constant 0 : i32
    %c0_i32_1 = arith.constant 0 : i32
    return %c0_i32, %c0_i32_0 : i32, i32
  }
}

</mosaic_0001>

<bundles_post_ra>
// kernel: attention_mil_forward.1
= control target key start
LH: loop header
LB: loop body
LE: loop exit
PB: predicated region body
PF: predicated region fallthrough
CT: control target
= control target key end

     0   :  { %s852_s0 = inlined_call_operand.vmem [shape: f32[48,32], index: 0, kind: input, shape index: {}]   ;;  %s853_s1 = inlined_call_operand.vmem [shape: f32[32,32], index: 1, kind: input, shape index: {}]   ;;  %s854_s2 = inlined_call_operand.vmem [shape: f32[1,32], index: 2, kind: input, shape index: {}]   ;;  %s855_s3 = inlined_call_operand.vmem [shape: f32[1,16], index: 3, kind: input, shape index: {}]   ;;  %s856_s4 = inlined_call_operand.<no memory space> [shape: f32[1,1], index: 4, kind: input, shape index: {}]   ;;  %s857_s5 = inlined_call_operand.vmem [shape: f32[48,1], index: 5, kind: output, shape index: {0}]   ;;  %s858_s6 = inlined_call_operand.hbm [shape: f32[1,32], index: 6, kind: output, shape index: {1}]  }
   0x1   :  { %12 = sst [smem:[#allocation5]] %s856_s4 }
   0x2   :  { %13 = vsyncpa [#allocation7], 0  ;;  %s761_s23 = smov 0  }
   0x3 LB: > { %s767_s24 = sadd.s32 4294967295, %s715_s23   ;;  %p593_p0 = scmp.ge.s32.totalorder %s715_s23, 1  ;;  %s715_s23 = sphi %s761_s23, %s19_s23  }
   0x4   : > { %p213_p1 = scmp.lt.s32.totalorder %s715_s23, 4 }
   0x6   : > { %p214_p2 = pnand %p593_p0, %p213_p1 }
   0x7   : > { %s594_s25 = sshll.u32 (!%p214_p2), %s767_s24, 1  ;;  %p598_p4 = scmp.ne.s32.totalorder (!%p214_p2), %s767_s24, 0 }
   0x8   : > { %217 = sbr.rel (%p214_p2) target bundleno = 875 (0x36b), region = 40  ;;  %p244_p3 = scmp.lt.s32.totalorder (!%p214_p2), %s594_s25, 5 }
   0xf   : > { %s860_s25 = smov (!%p244_p3, %s594_s25), 5  ;;  %258 = sbr.rel (%p598_p4) target bundleno = 22 (0x16), region = 44 }
  0x10   : > { %s595_s4 = sshll.u32 %s860_s25, 3  ;;  %vm259_vm0 = vcmask (!%p598_p4), 0   ;;  %vm262_vm1 = vcmask (!%p598_p4), 253952   ;;  %v717_v0 = vmov (!%p598_p4), -inf   ;;  %v718_v1 = vmov (!%p598_p4), 0.0  }
  0x11   : > { %s247_s28 = scalar_lea.vmem %s852_s0, %s595_s4  ;;  %s778_s7 = scalar_lea.vmem %s857_s5, %s595_s4  ;;  %260 = vst.msk [vmem:[#allocation2] sm:$0x1] (!%p598_p4), %vm259_vm0, %v717_v0  ;;  %261 = vst.msk [vmem:[#allocation3] sm:$0x1] (!%p598_p4), %vm259_vm0, %v718_v1 }
  0x12   : > { %263 = vst.msk [vmem:[#allocation4] sm:$0x1] (!%p598_p4), %vm262_vm1, %v718_v1 }
  0x16 PF: > { %v266_v2 = vld [vmem:[%s853_s1] sm:$0xff]  ;;  %v267_v3 = vld [vmem:[%s853_s1 + $0x8] sm:$0xff]  ;;  %v268_v4 = vld [vmem:[%s853_s1 + $0x10] sm:$0xff]  ;;  %vm277_vm2 = vcmask 261120   ;;  %s719_s18 = smov 112   ;;  %vm392_vm3 = vcmask 130048   ;;  %v407_v35 = vlaneseq }
  0x17   : > { %v628_v5 = vpack.c.bf16 %v267_v3, %v266_v2  ;;  %v269_v6 = vld [vmem:[%s853_s1 + $0x18] sm:$0xff]  ;;  %v793_v7 = vld [vmem:[%s247_s28] sm:$0xff]  ;;  %v797_v9 = vld [vmem:[%s247_s28 + $0x8] sm:$0xff]  ;;  %v720_v34 = vmov 0   ;;  %s399_s21 = sld [smem:[#allocation5]]  ;;  %s605_s22 = sshll.u32 %s767_s24, 4 }
  0x18   : > { %v632_v8 = vpack.c.bf16 %v269_v6, %v268_v4  ;;  %625 = vmatprep.mubr.msk.f32.mxu0 %vm277_vm2, %v793_v7  ;;  %v599_v10 = vld [vmem:[%s854_s2] ss:$0 sm:$0xff]  ;;  %657 = vset.pattern.permute.xlu1 %v720_v34  ;;  %v408_v36 = vshrl.u32 %v407_v35, 7  ;;  %v410_v38 = vstv %s605_s22  ;;  %vm403_vm4 = vcmask 7168   ;;  %p606_p5 = scmp.ne.s32.totalorder %s767_s24, 2 }
  0x19   : > { %629 = vmatprep.subr.bf16.mxu0 %v628_v5  ;;  %v604_v25 = vld [vmem:[%s855_s3] ss:$0 sm:$0xff]  ;;  %656 = vset.pattern.permute.xlu0 %v720_v34  ;;  %vm453_vm7 = vcmask 0   ;;  %vm489_vm8 = vcmask 253952   ;;  %v721_v35 = vmov (!%p606_p5), 0  }
  0x1a   : > { %631 = vmatpush3.bf16.msra.mxu0 %v628_v5  ;;  %v409_v37 = vadd.s32 8, %v408_v36  ;;  %v411_v40 = vadd.s32 %v410_v38, %v408_v36  ;;  %v417_v54 = vld [vmem:[#allocation2] sm:$0x1]  ;;  %v812_v55 = vsub.s32 0, %v408_v36 }
  0x1b   : > { %633 = vmatprep.subr.bf16.mxu0 %v632_v8 }
  0x1c   : > { %v412_v42 = vadd.s32 %v410_v38, %v409_v37  ;;  %vm413_vm5 = vcmp.lt.s32.totalorder %v411_v40, 40 }
  0x1d   : > { %v400_v39 = vstv %s399_s21 }
  0x1e   : > { %635 = vmatpush3.bf16.msra.mxu0 %v632_v8  ;;  %vm414_vm6 = vcmp.lt.s32.totalorder %v412_v42, 40 }
  0x21   : > { %626 = vmatmul.mubr.msk.f32.vlgmr.msra.gmra.mrb[0].mxu0 %vm277_vm2, %v797_v9 }
  0xf4   : > { %v627_v11 = vpop.f32.mrb[0].mxu0 }
  0xf5   : > { %v356_v12 = vadd.f32 %v627_v11, %v599_v10  ;;  %v350_v13 = vpop.f32.mrb[1].mxu0 }
  0xf6   : > { %v351_v14 = vadd.f32 %v599_v10, %v350_v13  ;;  %v441_v13 = vld [vmem:[#allocation3] sm:$0x1] }
  0xf7   : > { %v603_v15 = vmul.f32 -1.442695, %v356_v12 }
  0xf8   : > { %v602_v16 = vmul.f32 -1.442695, %v351_v14 }
  0xf9   : > { %658 = vpow2.f32 %v603_v15 }
  0xfa   : > { %660 = vpow2.f32 %v602_v16 }
 0x103   : > { %v659_v17 = vpop.eup %658 }
 0x104   : > { %v661_v18 = vpop.eup %660  ;;  %v368_v20 = vadd.f32 1.0, %v659_v17 }
 0x105   : > { %v367_v19 = vadd.f32 1.0, %v661_v18 }
 0x107   : > { %662 = vrcp.f32 %v367_v19 }
 0x108   : > { %664 = vrcp.f32 %v368_v20 }
 0x109   : > { %666 = vtanh.f32 %v351_v14 }
 0x10a   : > { %668 = vtanh.f32 %v356_v12 }
 0x111   : > { %v663_v21 = vpop.eup %662 }
 0x112   : > { %375 = vrot.lane.b32.xlu0 %v663_v21, %s719_s18  ;;  %v665_v22 = vpop.eup %664 }
 0x113   : > { %v667_v23 = vpop.eup %666 }
 0x114   : > { %v669_v28 = vpop.eup %668 }
 0x116   : > { %377 = vrot.lane.b32.xlu0 %v665_v22, %s719_s18 }
 0x184   : > { %v376_v24 = vpop.permute.xlu0 %375 }
 0x185   : > { %v381_v26 = vmul.f32 %v667_v23, %v376_v24 }
 0x187   : > { %v390_v27 = vmul.f32 %v604_v25, %v381_v26 }
 0x188   : > { %v378_v29 = vpop.permute.xlu0 %377 }
 0x189   : > { %v382_v30 = vmul.f32 %v669_v28, %v378_v29  ;;  %v393_v31 = vsel %vm392_vm3, %v390_v27, 0.0 }
 0x18a   : > { %394 = vadd.xlane.f32.xlu1 %v393_v31  ;;  %v477_v31 = vld [vmem:[#allocation4] sm:$0x1] }
 0x18b   : > { %v391_v32 = vmul.f32 %v604_v25, %v382_v30 }
 0x18d   : > { %v396_v33 = vsel %vm392_vm3, %v391_v32, 0.0 }
 0x18e   : > { %397 = vadd.xlane.f32.xlu1 %v396_v33 }
 0x217   : > { %v395_v41 = vpop.xlane.xlu1 %394 }
 0x218   : > { %v401_v43 = vadd.f32 %v400_v39, %v395_v41 }
 0x21a   : > { %404 = vst.msk [vmem:[%s778_s7] sm:$0xff] %vm403_vm4, %v401_v43  ;;  %v415_v46 = vsel %vm413_vm5, %v401_v43, -inf }
 0x21b   : > { %v398_v44 = vpop.xlane.xlu1 %397 }
 0x21c   : > { %v402_v45 = vadd.f32 %v400_v39, %v398_v44 }
 0x21e   : > { %405 = vst.msk [vmem:[%s778_s7 + $0x8] sm:$0xff] %vm403_vm4, %v402_v45  ;;  %v416_v47 = vsel %vm414_vm6, %v402_v45, -inf }
 0x21f   : > { %v418_v48 = vmax.f32 %v415_v46, %v416_v47 }
 0x221   : > { %v419_v49 = vrot.slane %v418_v48, 4 }
 0x223   : > { %v420_v50 = vmax.f32 %v418_v48, %v419_v49 }
 0x225   : > { %v421_v51 = vrot.slane %v420_v50, 2 }
 0x227   : > { %v422_v52 = vmax.f32 %v420_v50, %v421_v51 }
 0x229   : > { %v423_v53 = vrot.slane %v422_v52, 1 }
 0x22b   : > { %v424_v56 = vmax.f32 %v422_v52, %v423_v53 }
 0x22d   : > { %v425_v57 = vmax.f32 %v417_v54, %v424_v56 }
 0x22f   : > { %v433_v58 = vrot.slane %v425_v57, %v812_v55  ;;  %455 = vst.msk [vmem:[#allocation2] sm:$0x1] %vm453_vm7, %v425_v57  ;;  %v426_v59 = vsub.f32 %v417_v54, %v425_v57 }
 0x231   : > { %v435_v60 = vsub.f32 %v415_v46, %v433_v58  ;;  %v436_v61 = vsub.f32 %v416_v47, %v433_v58  ;;  %v427_v0 = vmul.f32 1.442695, %v426_v59 }
 0x233   : > { %v437_v62 = vmul.f32 1.442695, %v435_v60  ;;  %v439_v63 = vmul.f32 1.442695, %v436_v61 }
 0x235   : > { %670 = vpow2.f32 %v437_v62 }
 0x236   : > { %672 = vpow2.f32 %v439_v63 }
 0x237   : > { %674 = vpow2.f32 %v427_v0 }
 0x23f   : > { %v671_v1 = vpop.eup %670 }
 0x240   : > { %v673_v2 = vpop.eup %672  ;;  %v443_v3 = vsel %vm403_vm4, %v671_v1, 0.0  ;;  %458 = vperm.xlu0 %656, %v671_v1  }
 0x241   : > { %v444_v4 = vsel %vm403_vm4, %v673_v2, 0.0  ;;  %463 = vperm.xlu1 %657, %v673_v2   ;;  %v675_v6 = vpop.eup %674 }
 0x242   : > { %v445_v5 = vadd.f32 %v444_v4, %v443_v3  ;;  %v442_v15 = vmul.f32 %v675_v6, %v441_v13 }
 0x244   : > { %v446_v8 = vrot.slane %v445_v5, 4  ;;  %480 = vperm.xlu0 %656, %v675_v6  }
 0x246   : > { %v447_v10 = vadd.f32 %v446_v8, %v445_v5 }
 0x248   : > { %v448_v11 = vrot.slane %v447_v10, 2  ;;  %676 = vset.pattern.permute.xlu0 (!%p606_p5), %v721_v35 }
 0x24a   : > { %v449_v12 = vadd.f32 %v448_v11, %v447_v10 }
 0x24c   : > { %v450_v14 = vrot.slane %v449_v12, 1 }
 0x24e   : > { %v451_v16 = vadd.f32 %v450_v14, %v449_v12 }
 0x250   : > { %v452_v17 = vadd.f32 %v451_v16, %v442_v15 }
 0x252   : > { %454 = vst.msk [vmem:[#allocation3] sm:$0x1] %vm453_vm7, %v452_v17 }
 0x2bf   : > { %v459_v18 = vpop.permute.xlu0 %458 }
 0x2c0   : > { %v464_v19 = vpop.permute.xlu1 %463  ;;  %v466_v20 = vmul.f32 %v459_v18, %v793_v7 }
 0x2c1   : > { %v467_v21 = vmul.f32 %v464_v19, %v797_v9  ;;  %v496_v9 = vld [vmem:[#allocation3] sm:$0x1] (!%p606_p5) }
 0x2c2   : > { %v468_v22 = vsel %vm277_vm2, %v466_v20, 0.0  ;;  %677 = vrcp.f32 (!%p606_p5), %v496_v9 }
 0x2c3   : > { %v469_v23 = vsel %vm277_vm2, %v467_v21, 0.0  ;;  %v481_v27 = vpop.permute.xlu0 %480 }
 0x2c4   : > { %v470_v24 = vadd.f32 %v469_v23, %v468_v22  ;;  %v486_v30 = vrot.slane %v481_v27, %v812_v55 }
 0x2c6   : > { %v471_v25 = vrot.slane %v470_v24, 4  ;;  %v487_v34 = vmul.f32 %v486_v30, %v477_v31 }
 0x2c8   : > { %v472_v26 = vadd.f32 %v471_v25, %v470_v24 }
 0x2ca   : > { %v473_v28 = vrot.slane %v472_v26, 2 }
 0x2cc   : > { %v474_v29 = vadd.f32 %v473_v28, %v472_v26  ;;  %v678_v36 = vpop.eup (!%p606_p5), %677 }
 0x2cd   : > { %500 = vperm.xlu0 (!%p606_p5), %676, %v678_v36  }
 0x2ce   : > { %v475_v32 = vrot.slane %v474_v29, 1  ;;  %494 = sbr.rel (%p606_p5) target bundleno = 850 (0x352), region = 48 }
 0x2d0   : > { %v476_v33 = vadd.f32 %v475_v32, %v474_v29 }
 0x2d2   : > { %v488_v7 = vadd.f32 %v487_v34, %v476_v33 }
 0x2d4   : > { %490 = vst.msk [vmem:[#allocation4] sm:$0x1] %vm489_vm8, %v488_v7 }
 0x2db   : > { %v495_v38 = vld [vmem:[#allocation4] sm:$0x1] }
 0x34c   : > { %v501_v37 = vpop.permute.xlu0 %500 }
 0x34d   : > { %v506_v39 = vrot.slane %v501_v37, %v812_v55 }
 0x34f   : > { %v507_v40 = vmul.f32 %v506_v39, %v495_v38 }
 0x351   : > { %508 = vst.msk [vmem:[#allocation6] sm:$0x1] %vm489_vm8, %v507_v40 }
 0x352 PF: > { %p640_p6 = scmp.eq.s32.totalorder %s767_s24, 2  ;;  %s722_s25 = smov [#allocation6]  }
 0x353   : > { %s525_s4 = sshll.u32 %s722_s25, 4  ;;  %s526_s4 = int_to_ptr.vmem [resolvable:$true] %s525_s4 }
 0x354   : > { %s679_s26 = scalar_lea.vmem %s526_s4, 16  ;;  %s685_s27 = scalar_lea.vmem %s526_s4, 32 }
 0x355   : > { %p680_p7 = scmp.ne.s32.totalorder %s526_s4, %s679_s26  ;;  %p686_p10 = scmp.lt.s32.totalorder %s526_s4, %s526_s4 }
 0x356   : > { %p687_p11 = scmp.lt.s32.totalorder %s685_s27, %s679_s26 }
 0x357   : > { %p681_p8 = pnand %p680_p7, %p640_p6 }
 0x358   : > { %p688_p12 = por %p687_p11, %p686_p10 }
 0x359   : > { %p682_p9 = pneg %p681_p8 }
 0x35b   : > { %p689_p13 = pnand %p688_p12, %p682_p9 }
 0x35d   : > { %692 = shalt.err (!%p689_p13)
}
 0x35e   : > { %s693_s30 = scalar_lea.hbm %s858_s6, 16 }
 0x35f   : > { %p694_p0 = scmp.ne.s32.totalorder %s858_s6, %s693_s30  ;;  %p699_p3 = scmp.lt.u32.totalorder %s693_s30, %s858_s6 }
 0x361   : > { %p695_p1 = pnand %p694_p0, %p640_p6 }
 0x363   : > { %p696_p2 = pneg %p695_p1 }
 0x365   : > { %p701_p4 = pnand %p699_p3, %p696_p2 }
 0x367   : > { %704 = shalt.err (!%p701_p4)
}
 0x368   : > { %637 = dma.vmem_to_hbm [thread:$0]  (%p640_p6), %s526_s4, 16, %s858_s6, [#allocation7]  }
 0x369   : > { %710 = dma.done.wait (%p640_p6), [#allocation7], 16  }
 0x36a   : > { %712 = vsyncadd (%p640_p6), [#allocation7], 4294967280 }
 0x36b PF: > { %s19_s23 = sadd.s32 1, %s715_s23  }
 0x36c   : > { %p16_p5 = scmp.ge.s32.totalorder %s19_s23, 5  }
 0x36e   :  { %18 = sbr.rel (!%p16_p5) target bundleno = 3 (0x3), region = 87 }
 0x375   :  { %546 = vsyncpa [#allocation7], 1 }
 0x376   :  { %548 = vsyncpa [#allocation7 + $0x1], 1 }

</bundles_post_ra>
